<compile_context>
chip_gen: v7x
topology: tpu7x:2x2x1
jax: 0.10.0
libtpu: 0.0.40
codegen_flags: <defaults>
</compile_context>

<pallas_src>
import functools

import jax
import jax.numpy as jnp
from jax.experimental import pallas as pl
from jax.experimental.pallas import tpu as pltpu


def _round_up(n, m):
    return ((n + m - 1) // m) * m


def _windowed_lane_sum(x, width, stride=1):
    """out[..., j] = sum_{k=0}^{width-1} x[..., j - k*stride] along the last axis.

    Log-depth accumulation on the XLU rotate unit.  Lanes whose window would reach
    below lane 0 contain wrapped garbage; callers only read anchor lanes
    (j = group_start + width - 1) whose window is fully in range.
    """
    if width <= 1:
        return x
    axis = x.ndim - 1
    acc = x
    span = 1
    while span * 2 <= width:
        acc = acc + pltpu.roll(acc, shift=span * stride, axis=axis)
        span *= 2
    rem = width - span
    if rem:
        acc = acc + pltpu.roll(_windowed_lane_sum(x, rem, stride),
                               shift=span * stride, axis=axis)
    return acc


def weighted_consequent_kernel(x_ref, wt_ref, cmask_ref, ws_ref, b_ref, out_ref, *, time_dim):
    """One batch block per grid step.

    x_ref     : [BB, S, C*T] VMEM  (batch block, sub, channel*time folded onto lanes)
    wt_ref    : [1, C*T]  time_linear weights tiled once per channel group
    cmask_ref : [1, C*T]  channel_linear weight at each T-group's anchor lane, 0 elsewhere
    ws_ref    : [S, 1]    sub_linear weights
    b_ref     : [3] SMEM  (time_b, chan_b, sub_b)
    out_ref   : [1, 1, BB]
    """
    bt = b_ref[0]
    bc = b_ref[1]
    bs = b_ref[2]

    # time_linear: weighted per-T-group lane reduction (VPU multiply + XLU roll/add).
    xw = x_ref[...] * wt_ref[...]                              # [BB, S, C*T]
    seg = _windowed_lane_sum(xw, time_dim)                     # group sums land at lane c*T + (T-1)
    y1 = jnp.maximum(seg + bt, 0.0)                            # ReLU (anchor lanes hold real y1)

    # channel_linear: masked full-lane reduce (mask carries chan_w at anchor lanes).
    t2 = jnp.sum(y1 * cmask_ref[...], axis=-1)                 # [BB, S]
    y2 = jnp.maximum(t2 + bc, 0.0)                             # ReLU

    # sub_linear + sigmoid, emitted as a lane-dense [1, BB] row.
    y2t = jnp.transpose(y2, (1, 0))                            # [S, BB]  (tiny XLU transpose)
    t3 = jnp.sum(y2t * ws_ref[...], axis=0, keepdims=True)     # [1, BB]
    out_ref[...] = jax.nn.sigmoid(t3 + bs)[None]               # [1, 1, BB]


def _choose_block_b(batch, per_elem_bytes):
    """~2 MiB of real input per grid step (double-buffered this stays inside v5e's
    16 MiB / v6e-v7x's 32 MiB default scoped VMEM), capped at 512 rows; larger
    batches get >=2 blocks so v7x megacore has work for both TensorCores."""
    budget = 2 * 1024 * 1024
    cap = min(512, max(8, budget // max(per_elem_bytes, 1)))
    cap = max(8, (cap // 128) * 128 if cap >= 128 else (cap // 8) * 8)
    if batch > cap:
        return cap
    if batch >= 256:
        return _round_up(pl.cdiv(batch, 2), 8)
    return _round_up(batch, 8)


def weighted_consequent_forward(x, params, *, block_b=None):
    """x: [B, S, C, T] -> [B, 1] float32 (matches the PyTorch forward)."""
    B, S, C, T = x.shape
    CT = C * T
    x = x.astype(jnp.float32).reshape(B, S, CT)            # metadata-only fold: lane axis = C*T

    time_w = params['time_w'].astype(jnp.float32).reshape(T)
    chan_w = params['chan_w'].astype(jnp.float32).reshape(C)
    sub_w = params['sub_w'].astype(jnp.float32).reshape(S)

    wt = jnp.tile(time_w, C).reshape(1, CT)                 # time weights per channel group
    anchors = jnp.arange(C) * T + (T - 1)                   # anchor lane of each T-group
    cmask = jnp.zeros((CT,), jnp.float32).at[anchors].set(chan_w).reshape(1, CT)
    ws = sub_w.reshape(S, 1)
    biases = jnp.stack([params['time_b'].reshape(()),
                        params['chan_b'].reshape(()),
                        params['sub_b'].reshape(())]).astype(jnp.float32)

    if block_b is None:
        block_b = _choose_block_b(B, S * CT * 4)
    num_blocks = pl.cdiv(B, block_b)
    b_pad = num_blocks * block_b
    if b_pad != B:
        x = jnp.pad(x, ((0, b_pad - B), (0, 0), (0, 0)))    # pad rows discarded below

    kernel = functools.partial(weighted_consequent_kernel, time_dim=T)
    out = pl.pallas_call(
        kernel,
        out_shape=jax.ShapeDtypeStruct((num_blocks, 1, block_b), jnp.float32),
        grid=(num_blocks,),
        in_specs=[
            pl.BlockSpec((block_b, S, CT), lambda i: (i, 0, 0)),
            pl.BlockSpec((1, CT), lambda i: (0, 0)),
            pl.BlockSpec((1, CT), lambda i: (0, 0)),
            pl.BlockSpec((S, 1), lambda i: (0, 0)),
            pl.BlockSpec(memory_space=pltpu.MemorySpace.SMEM),
        ],
        out_specs=pl.BlockSpec((1, 1, block_b), lambda i: (i, 0, 0)),
        compiler_params=pltpu.CompilerParams(
            dimension_semantics=("parallel",),
            vmem_limit_bytes=32 * 1024 * 1024,
        ),
    )(x, wt, cmask, ws, biases)

    return out.reshape(b_pad)[:B].reshape(B, 1)


def init_params(key, sub_dim, channel_dim, time_dim):
    """PyTorch-style nn.Linear(dim, 1) uniform init, deterministic."""
    ks = jax.random.split(key, 6)

    def u(k, shape, bound):
        return jax.random.uniform(k, shape, jnp.float32, -bound, bound)

    kt = 1.0 / float(time_dim) ** 0.5
    kc = 1.0 / float(channel_dim) ** 0.5
    ksb = 1.0 / float(sub_dim) ** 0.5
    return {
        'time_w': u(ks[0], (time_dim,), kt), 'time_b': u(ks[1], (1,), kt),
        'chan_w': u(ks[2], (channel_dim,), kc), 'chan_b': u(ks[3], (1,), kc),
        'sub_w': u(ks[4], (sub_dim,), ksb), 'sub_b': u(ks[5], (1,), ksb),
    }


def reference_forward(x, p):
    """Pure-JAX mirror of the PyTorch module, for verification."""
    y1 = jnp.maximum(jnp.einsum('bsct,t->bsc', x, p['time_w']) + p['time_b'][0], 0.0)
    y2 = jnp.maximum(jnp.einsum('bsc,c->bs', y1, p['chan_w']) + p['chan_b'][0], 0.0)
    y3 = jnp.einsum('bs,s->b', y2, p['sub_w']) + p['sub_b'][0]
    return jax.nn.sigmoid(y3)[:, None]


if __name__ == "__main__":
    key = jax.random.PRNGKey(0)
    kx, kp = jax.random.split(key)

    # Small shapes consistent with the module: batch=2, sub=4, channel=16, time=16.
    B, S, C, T = 2, 4, 16, 16
    x = jax.random.normal(kx, (B, S, C, T), jnp.float32)
    params = init_params(kp, S, C, T)

    out = jax.block_until_ready(weighted_consequent_forward(x, params))
    assert out.shape == (B, 1)
    ref = reference_forward(x, params)
    if not bool(jnp.allclose(out, ref, atol=1e-5, rtol=1e-5)):
        raise AssertionError(f"mismatch: kernel={out}, ref={ref}")

    # Exercise the multi-block + batch-tail path (3 blocks of 16, last one padded).
    B2 = 37
    x2 = jax.random.normal(jax.random.PRNGKey(1), (B2, S, C, T), jnp.float32)
    out2 = jax.block_until_ready(weighted_consequent_forward(x2, params, block_b=16))
    ref2 = reference_forward(x2, params)
    if not bool(jnp.allclose(out2, ref2, atol=1e-5, rtol=1e-5)):
        raise AssertionError("mismatch on multi-block / padded-tail path")

    print("KERNEL_OK")
</pallas_src>

<mosaic_0001>
module attributes {stable_mosaic.version = 11 : i64} {
  func.func @weighted_consequent_kernel(%arg0: i32, %arg1: memref<8x4x256xf32, #tpu.memory_space<vmem>>, %arg2: memref<1x256xf32, #tpu.memory_space<vmem>>, %arg3: memref<1x256xf32, #tpu.memory_space<vmem>>, %arg4: memref<4x1xf32, #tpu.memory_space<vmem>>, %arg5: memref<3xf32, #tpu.memory_space<smem>>, %arg6: memref<1x1x8xf32, #tpu.memory_space<vmem>>) attributes {dimension_semantics = [#tpu.dimension_semantics<parallel>], iteration_bounds = array<i64: 1>, scalar_prefetch = 0 : i64, scratch_operands = 0 : i64, tpu.core_type = #tpu.core_type<tc>, window_params = [{transform_indices = @transform_0, window_bounds = array<i64: 8, 4, 256>}, {pipeline_mode = #tpu.pipeline_mode<synchronous>, transform_indices = @transform_1, window_bounds = array<i64: 1, 256>}, {pipeline_mode = #tpu.pipeline_mode<synchronous>, transform_indices = @transform_2, window_bounds = array<i64: 1, 256>}, {pipeline_mode = #tpu.pipeline_mode<synchronous>, transform_indices = @transform_3, window_bounds = array<i64: 4, 1>}, {transform_indices = @transform_4, window_bounds = array<i64: 3>}, {transform_indices = @transform_5, window_bounds = array<i64: 1, 1, 8>}]} {
    %c0 = arith.constant 0 : index
    %0 = memref.load %arg5[%c0] : memref<3xf32, #tpu.memory_space<smem>>
    %c1 = arith.constant 1 : index
    %1 = memref.load %arg5[%c1] : memref<3xf32, #tpu.memory_space<smem>>
    %c2 = arith.constant 2 : index
    %2 = memref.load %arg5[%c2] : memref<3xf32, #tpu.memory_space<smem>>
    %c0_0 = arith.constant 0 : index
    %c0_1 = arith.constant 0 : index
    %c0_2 = arith.constant 0 : index
    %3 = vector.load %arg1[%c0_0, %c0_1, %c0_2] : memref<8x4x256xf32, #tpu.memory_space<vmem>>, vector<8x4x256xf32>
    %c0_3 = arith.constant 0 : index
    %c0_4 = arith.constant 0 : index
    %4 = vector.load %arg2[%c0_3, %c0_4] : memref<1x256xf32, #tpu.memory_space<vmem>>, vector<1x256xf32>
    %5 = vector.shape_cast %4 : vector<1x256xf32> to vector<1x1x256xf32>
    %6 = vector.broadcast %5 : vector<1x1x256xf32> to vector<8x4x256xf32>
    %7 = arith.mulf %3, %6 : vector<8x4x256xf32>
    %c1_i32 = arith.constant 1 : i32
    %8 = tpu.dynamic_rotate %7 by %c1_i32 dim 2 : vector<8x4x256xf32>, i32 -> vector<8x4x256xf32>
    %9 = arith.addf %7, %8 : vector<8x4x256xf32>
    %c2_i32 = arith.constant 2 : i32
    %10 = tpu.dynamic_rotate %9 by %c2_i32 dim 2 : vector<8x4x256xf32>, i32 -> vector<8x4x256xf32>
    %11 = arith.addf %9, %10 : vector<8x4x256xf32>
    %c4_i32 = arith.constant 4 : i32
    %12 = tpu.dynamic_rotate %11 by %c4_i32 dim 2 : vector<8x4x256xf32>, i32 -> vector<8x4x256xf32>
    %13 = arith.addf %11, %12 : vector<8x4x256xf32>
    %c8_i32 = arith.constant 8 : i32
    %14 = tpu.dynamic_rotate %13 by %c8_i32 dim 2 : vector<8x4x256xf32>, i32 -> vector<8x4x256xf32>
    %15 = arith.addf %13, %14 : vector<8x4x256xf32>
    %16 = vector.broadcast %0 : f32 to vector<8x4x256xf32>
    %17 = arith.addf %15, %16 : vector<8x4x256xf32>
    %cst = arith.constant 0.000000e+00 : f32
    %18 = vector.broadcast %cst : f32 to vector<8x4x256xf32>
    %19 = arith.maximumf %17, %18 : vector<8x4x256xf32>
    %c0_5 = arith.constant 0 : index
    %c0_6 = arith.constant 0 : index
    %20 = vector.load %arg3[%c0_5, %c0_6] : memref<1x256xf32, #tpu.memory_space<vmem>>, vector<1x256xf32>
    %21 = vector.shape_cast %20 : vector<1x256xf32> to vector<1x1x256xf32>
    %22 = vector.broadcast %21 : vector<1x1x256xf32> to vector<8x4x256xf32>
    %23 = arith.mulf %19, %22 : vector<8x4x256xf32>
    %cst_7 = arith.constant dense<0.000000e+00> : vector<8x4xf32>
    %24 = vector.multi_reduction <add>, %23, %cst_7 [2] : vector<8x4x256xf32> to vector<8x4xf32>
    %25 = vector.broadcast %1 : f32 to vector<8x4xf32>
    %26 = arith.addf %24, %25 : vector<8x4xf32>
    %cst_8 = arith.constant 0.000000e+00 : f32
    %27 = vector.broadcast %cst_8 : f32 to vector<8x4xf32>
    %28 = arith.maximumf %26, %27 : vector<8x4xf32>
    %29 = tpu.transpose %28, [1, 0] : vector<8x4xf32> -> vector<4x8xf32>
    %c0_9 = arith.constant 0 : index
    %c0_10 = arith.constant 0 : index
    %30 = vector.load %arg4[%c0_9, %c0_10] : memref<4x1xf32, #tpu.memory_space<vmem>>, vector<4x1xf32>
    %31 = vector.broadcast %30 : vector<4x1xf32> to vector<4x8xf32>
    %32 = arith.mulf %29, %31 : vector<4x8xf32>
    %cst_11 = arith.constant dense<0.000000e+00> : vector<8xf32>
    %33 = vector.multi_reduction <add>, %32, %cst_11 [0] : vector<4x8xf32> to vector<8xf32>
    %34 = vector.shape_cast %33 : vector<8xf32> to vector<1x8xf32>
    %35 = vector.broadcast %2 : f32 to vector<1x8xf32>
    %36 = arith.addf %34, %35 : vector<1x8xf32>
    %37 = arith.negf %36 : vector<1x8xf32>
    %38 = math.exp %37 : vector<1x8xf32>
    %cst_12 = arith.constant 1.000000e+00 : f32
    %39 = vector.broadcast %cst_12 : f32 to vector<1x8xf32>
    %40 = arith.addf %39, %38 : vector<1x8xf32>
    %41 = arith.divf %39, %40 : vector<1x8xf32>
    %42 = vector.shape_cast %41 : vector<1x8xf32> to vector<1x1x8xf32>
    %c0_13 = arith.constant 0 : index
    %c0_14 = arith.constant 0 : index
    %c0_15 = arith.constant 0 : index
    %43 = vector.load %arg6[%c0_13, %c0_14, %c0_15] : memref<1x1x8xf32, #tpu.memory_space<vmem>>, vector<1x1x8xf32>
    tpu.vector_store %arg6[%c0_13, %c0_14, %c0_15], %42 {strides = array<i32>} : memref<1x1x8xf32, #tpu.memory_space<vmem>>, vector<1x1x8xf32>,
    return
  }
  func.func @transform_0(%arg0: i32) -> (i32, i32, i32) {
    %c0_i32 = arith.constant 0 : i32
    %c0_i32_0 = arith.constant 0 : i32
    %c0_i32_1 = arith.constant 0 : i32
    return %arg0, %c0_i32, %c0_i32_0 : i32, i32, i32
  }
  func.func @transform_1(%arg0: i32) -> (i32, i32) {
    %c0_i32 = arith.constant 0 : i32
    %c0_i32_0 = arith.constant 0 : i32
    %c0_i32_1 = arith.constant 0 : i32
    return %c0_i32, %c0_i32_0 : i32, i32
  }
  func.func @transform_2(%arg0: i32) -> (i32, i32) {
    %c0_i32 = arith.constant 0 : i32
    %c0_i32_0 = arith.constant 0 : i32
    %c0_i32_1 = arith.constant 0 : i32
    return %c0_i32, %c0_i32_0 : i32, i32
  }
  func.func @transform_3(%arg0: i32) -> (i32, i32) {
    %c0_i32 = arith.constant 0 : i32
    %c0_i32_0 = arith.constant 0 : i32
    %c0_i32_1 = arith.constant 0 : i32
    return %c0_i32, %c0_i32_0 : i32, i32
  }
  func.func @transform_4(%arg0: i32) -> i32 {
    %c0_i32 = arith.constant 0 : i32
    %c0_i32_0 = arith.constant 0 : i32
    return %c0_i32 : i32
  }
  func.func @transform_5(%arg0: i32) -> (i32, i32, i32) {
    %c0_i32 = arith.constant 0 : i32
    %c0_i32_0 = arith.constant 0 : i32
    %c0_i32_1 = arith.constant 0 : i32
    return %arg0, %c0_i32, %c0_i32_0 : i32, i32, i32
  }
}

</mosaic_0001>

<bundles_post_ra>
// kernel: tpu_custom_call.1
= control target key start
LH: loop header
LB: loop body
LE: loop exit
PB: predicated region body
PF: predicated region fallthrough
CT: control target
= control target key end

     0   :  { %10 = vsyncpa [#allocation3], 0  ;;  %s1353_s0 = inlined_call_operand.hbm [shape: f32[8,4,256], index: 0, kind: input, shape index: {}]   ;;  %s1354_s1 = inlined_call_operand.vmem [shape: f32[1,256], index: 1, kind: input, shape index: {}]   ;;  %s1355_s2 = inlined_call_operand.vmem [shape: f32[1,256], index: 2, kind: input, shape index: {}]   ;;  %s1356_s3 = inlined_call_operand.vmem [shape: f32[4,1], index: 3, kind: input, shape index: {}]   ;;  %s1357_s4 = inlined_call_operand.vmem [shape: f32[3], index: 4, kind: input, shape index: {}]   ;;  %s1358_s5 = inlined_call_operand.hbm [shape: f32[1,1,8], index: 5, kind: output, shape index: {}]  }
   0x1   :  { %11 = vsyncpa [#allocation5], 0 }
   0x2   :  { %12 = vsyncpa [#allocation4], 0  ;;  %s861_s18 = smov [#allocation2]   ;;  %s37_s22 = sshll.u32 %s1357_s4, 4  ;;  %s38_s22 = int_to_ptr.vmem [resolvable:$true] %s37_s22 }
   0x3   :  { %s18_s19 = sshll.u32 %s861_s18, 4  ;;  %s799_s25 = scalar_lea.hbm %s1353_s0, 1024  ;;  %s19_s19 = int_to_ptr.vmem [resolvable:$true] %s18_s19 }
   0x4   :  { %p800_p0 = scmp.ne.s32.totalorder %s1353_s0, %s799_s25  ;;  %p803_p1 = scmp.lt.u32.totalorder %s799_s25, %s1353_s0 }
   0x6   :  { %p805_p2 = pnand %p803_p1, %p800_p0 }
   0x8   :  { %808 = shalt.err (!%p805_p2)
}
   0x9   :  { %s809_s30 = scalar_lea.vmem %s19_s19, 1024  ;;  %p814_p4 = scmp.lt.s32.totalorder %s19_s19, %s19_s19 }
   0xa   :  { %p810_p3 = scmp.ne.s32.totalorder %s19_s19, %s809_s30  ;;  %p815_p5 = scmp.lt.s32.totalorder %s809_s30, %s809_s30 }
   0xc   :  { %p816_p6 = por %p815_p5, %p814_p4 }
   0xe   :  { %p817_p7 = pnand %p816_p6, %p810_p3 }
  0x10   :  { %820 = shalt.err (!%p817_p7)
}
  0x11   :  { %s862_s4 = smov 128   ;;  %s863_s6 = smov 8  }
  0x12   :  { %24 = dma.hbm_to_vmem [thread:$0]  %s1353_s0, 1024, %s19_s19, [#allocation3], %s862_s4, %s862_s4, %s863_s6  }
  0x13   :  { %s821_s9 = scalar_lea.vmem %s38_s22, 16  ;;  %p826_p9 = scmp.lt.s32.totalorder %s38_s22, %s38_s22 }
  0x14   :  { %p822_p8 = scmp.ne.s32.totalorder %s38_s22, %s821_s9  ;;  %p827_p10 = scmp.lt.s32.totalorder %s821_s9, %s821_s9 }
  0x16   :  { %p828_p11 = por %p827_p10, %p826_p9 }
  0x18   :  { %p829_p12 = pnand %p828_p11, %p822_p8 }
  0x1a   :  { %832 = shalt.err (!%p829_p12)
}
  0x1b   :  { %s864_s10 = smov [#allocation6]  }
  0x1c   :  { %40 = dma.vmem_to_smem %s38_s22, 16, %s864_s10, [#allocation5]  }
  0x1d   :  { %855 = dma.done.wait [#allocation3], 1024  }
  0x1e   :  { %856 = vsyncadd [#allocation3], 4294966272 }
  0x1f   :  { %857 = dma.done.wait [#allocation5], 16  }
  0x20   :  { %858 = vsyncadd [#allocation5], 4294967280 }
  0x21   :  { %47 = sfence }
  0x22   :  { %v61_v0 = vlaneseq  ;;  %v59_v2 = vld [vmem:[%s1354_s1] sm:$0x3]  ;;  %v52_v8 = vld [vmem:[#allocation2 + $0x8] sm:$0xff]  ;;  %v53_v12 = vld [vmem:[#allocation2 + $0x10] sm:$0xff]  ;;  %s865_s12 = smov 1   ;;  %s866_s1 = smov 2  }
  0x23   :  { %v51_v7 = vld [vmem:[#allocation2] sm:$0xff]  ;;  %v54_v16 = vld [vmem:[#allocation2 + $0x18] sm:$0xff]  ;;  %v56_v22 = vld [vmem:[#allocation2 + $0x28] sm:$0xff]  ;;  %s867_s13 = smov 4   ;;  %s48_s14 = sld [smem:[#allocation6]]  ;;  %vm594_vm4 = vcmask 1043456  }
  0x24   :  { %v916_v1 = vshrl.u32 %v61_v0, 7  ;;  %v55_v19 = vld [vmem:[#allocation2 + $0x20] sm:$0xff]  ;;  %v57_v25 = vld [vmem:[#allocation2 + $0x30] sm:$0xff]  ;;  %v58_v28 = vld [vmem:[#allocation2 + $0x38] sm:$0xff]  ;;  %v963_v32 = vand.u32 127, %v61_v0  ;;  %s780_s18 = sld [smem:[#allocation6 + $0x1]] }
  0x25   :  { %vm692_vm5 = vcmask 1041409   ;;  %vm694_vm6 = vcmask 1042434   ;;  %vm696_vm7 = vcmask 1043459   ;;  %vm698_vm8 = vcmask 1044484   ;;  %s869_s19 = smov [#allocation7]  }
  0x26   :  { %v63_v3 = vsub.s32 0, %v916_v1  ;;  %v67_v4 = vsub.s32 1, %v916_v1  ;;  %vm137_vm0 = vcmp.lt.s32.totalorder %v963_v32, 1  ;;  %vm250_vm1 = vcmp.lt.s32.totalorder %v963_v32, 2  ;;  %s770_s20 = sshll.u32 %s869_s19, 4  ;;  %s771_s20 = int_to_ptr.vmem [resolvable:$true] %s770_s20 }
  0x27   :  { %vm363_vm2 = vcmp.lt.s32.totalorder %v963_v32, 4  ;;  %vm476_vm3 = vcmp.lt.s32.totalorder %v963_v32, 8  ;;  %vm700_vm9 = vcmask 1045509   ;;  %vm702_vm10 = vcmask 1046534   ;;  %s833_s21 = scalar_lea.vmem %s771_s20, 16  ;;  %s837_s22 = scalar_lea.vmem %s771_s20, 32 }
  0x28   :  { %v64_v5 = vrot.slane %v59_v2, %v63_v3  ;;  %v68_v6 = vrot.slane %v59_v2, %v67_v4  ;;  %vm704_vm11 = vcmask 1047559   ;;  %vm746_vm12 = vcmask 60416   ;;  %p834_p13 = scmp.ne.s32.totalorder %s771_s20, %s833_s21  ;;  %p838_p0 = scmp.lt.s32.totalorder %s771_s20, %s771_s20 }
  0x29   :  { %vm762_vm13 = vcmask 57344   ;;  %p839_p1 = scmp.lt.s32.totalorder %s837_s22, %s833_s21 }
  0x2a   :  { %v69_v9 = vcombine.low %v64_v5, %v68_v6 }
  0x2b   :  { %p840_p2 = por %p839_p1, %p838_p0 }
  0x2c   :  { %v71_v10 = vmul.f32 %v69_v9, %v51_v7  ;;  %v72_v11 = vmul.f32 %v69_v9, %v52_v8  ;;  %v73_v15 = vmul.f32 %v69_v9, %v53_v12  ;;  %v74_v18 = vmul.f32 %v69_v9, %v54_v16 }
  0x2d   :  { %v933_v21 = vmul.f32 %v69_v9, %v55_v19  ;;  %v939_v24 = vmul.f32 %v69_v9, %v56_v22  ;;  %v946_v27 = vmul.f32 %v69_v9, %v57_v25  ;;  %v953_v30 = vmul.f32 %v69_v9, %v58_v28  ;;  %p841_p3 = pnand %p840_p2, %p834_p13 }
  0x2e   :  { %103 = vrot.lane.b32.xlu0 %v71_v10, %s865_s12  ;;  %v87_v13 = vcombine.high %v71_v10, %v71_v10  ;;  %v88_v14 = vcombine.high %v72_v11, %v72_v11  ;;  %v89_v17 = vcombine.high %v73_v15, %v73_v15  ;;  %v90_v20 = vcombine.high %v74_v18, %v74_v18 }
  0x2f   :  { %v91_v23 = vcombine.high %v933_v21, %v933_v21  ;;  %v92_v26 = vcombine.high %v939_v24, %v939_v24  ;;  %v93_v29 = vcombine.high %v946_v27, %v946_v27  ;;  %v94_v31 = vcombine.high %v953_v30, %v953_v30 }
  0x30   :  { %119 = vrot.lane.b32.xlu1 %v87_v13, %s865_s12 }
  0x32   :  { %105 = vrot.lane.b32.xlu0 %v72_v11, %s865_s12 }
  0x34   :  { %121 = vrot.lane.b32.xlu1 %v88_v14, %s865_s12 }
  0x36   :  { %107 = vrot.lane.b32.xlu0 %v73_v15, %s865_s12 }
  0x38   :  { %123 = vrot.lane.b32.xlu1 %v89_v17, %s865_s12 }
  0x3a   :  { %109 = vrot.lane.b32.xlu0 %v74_v18, %s865_s12 }
  0x3c   :  { %125 = vrot.lane.b32.xlu1 %v90_v20, %s865_s12 }
  0x3e   :  { %111 = vrot.lane.b32.xlu0 %v933_v21, %s865_s12 }
  0x40   :  { %127 = vrot.lane.b32.xlu1 %v91_v23, %s865_s12 }
  0x42   :  { %113 = vrot.lane.b32.xlu0 %v939_v24, %s865_s12 }
  0x44   :  { %129 = vrot.lane.b32.xlu1 %v92_v26, %s865_s12 }
  0x46   :  { %115 = vrot.lane.b32.xlu0 %v946_v27, %s865_s12 }
  0x48   :  { %131 = vrot.lane.b32.xlu1 %v93_v29, %s865_s12 }
  0x4a   :  { %117 = vrot.lane.b32.xlu0 %v953_v30, %s865_s12 }
  0x4c   :  { %133 = vrot.lane.b32.xlu1 %v94_v31, %s865_s12 }
  0xa0   :  { %v104_v33 = vpop.permute.xlu0 %103 }
  0xa2   :  { %v120_v34 = vpop.permute.xlu1 %119 }
  0xa3   :  { %v138_v35 = vsel %vm137_vm0, %v104_v33, %v120_v34  ;;  %v146_v36 = vsel %vm137_vm0, %v120_v34, %v104_v33 }
  0xa4   :  { %v170_v37 = vcombine.low %v146_v36, %v138_v35  ;;  %v106_v38 = vpop.permute.xlu0 %105 }
  0xa6   :  { %v122_v39 = vpop.permute.xlu1 %121  ;;  %v970_v40 = vadd.f32 %v170_v37, %v71_v10 }
  0xa7   :  { %v139_v41 = vsel %vm137_vm0, %v106_v38, %v122_v39  ;;  %v147_v42 = vsel %vm137_vm0, %v122_v39, %v106_v38 }
  0xa8   :  { %v171_v43 = vcombine.low %v147_v42, %v139_v41  ;;  %218 = vrot.lane.b32.xlu0 %v970_v40, %s866_s1  ;;  %v108_v44 = vpop.permute.xlu0 %107 }
  0xaa   :  { %v124_v45 = vpop.permute.xlu1 %123  ;;  %v978_v46 = vadd.f32 %v171_v43, %v72_v11 }
  0xab   :  { %v140_v47 = vsel %vm137_vm0, %v108_v44, %v124_v45  ;;  %v148_v48 = vsel %vm137_vm0, %v124_v45, %v108_v44 }
  0xac   :  { %v172_v49 = vcombine.low %v148_v48, %v140_v47  ;;  %220 = vrot.lane.b32.xlu1 %v978_v46, %s866_s1  ;;  %v110_v50 = vpop.permute.xlu0 %109  ;;  %v203_v52 = vcombine.high %v978_v46, %v978_v46 }
  0xae   :  { %v126_v51 = vpop.permute.xlu1 %125  ;;  %v988_v53 = vadd.f32 %v172_v49, %v73_v15 }
  0xaf   :  { %v141_v54 = vsel %vm137_vm0, %v110_v50, %v126_v51  ;;  %v149_v55 = vsel %vm137_vm0, %v126_v51, %v110_v50 }
  0xb0   :  { %v173_v56 = vcombine.low %v149_v55, %v141_v54  ;;  %236 = vrot.lane.b32.xlu1 %v203_v52, %s866_s1  ;;  %222 = vrot.lane.b32.xlu0 %v988_v53, %s866_s1  ;;  %v112_v57 = vpop.permute.xlu0 %111  ;;  %v204_v59 = vcombine.high %v988_v53, %v988_v53 }
  0xb2   :  { %v128_v58 = vpop.permute.xlu1 %127  ;;  %v999_v60 = vadd.f32 %v173_v56, %v74_v18  ;;  %v202_v18 = vcombine.high %v970_v40, %v970_v40 }
  0xb3   :  { %v142_v61 = vsel %vm137_vm0, %v112_v57, %v128_v58  ;;  %v150_v62 = vsel %vm137_vm0, %v128_v58, %v112_v57 }
  0xb4   :  { %v174_v63 = vcombine.low %v150_v62, %v142_v61  ;;  %238 = vrot.lane.b32.xlu1 %v204_v59, %s866_s1  ;;  %224 = vrot.lane.b32.xlu0 %v999_v60, %s866_s1  ;;  %v114_v0 = vpop.permute.xlu0 %113  ;;  %v205_v5 = vcombine.high %v999_v60, %v999_v60 }
  0xb6   :  { %v130_v2 = vpop.permute.xlu1 %129  ;;  %v1011_v6 = vadd.f32 %v174_v63, %v933_v21 }
  0xb7   :  { %v143_v7 = vsel %vm137_vm0, %v114_v0, %v130_v2  ;;  %v151_v8 = vsel %vm137_vm0, %v130_v2, %v114_v0 }
  0xb8   :  { %v175_v9 = vcombine.low %v151_v8, %v143_v7  ;;  %240 = vrot.lane.b32.xlu1 %v205_v5, %s866_s1  ;;  %226 = vrot.lane.b32.xlu0 %v1011_v6, %s866_s1  ;;  %v116_v10 = vpop.permute.xlu0 %115  ;;  %v206_v11 = vcombine.high %v1011_v6, %v1011_v6 }
  0xba   :  { %v1023_v12 = vadd.f32 %v175_v9, %v939_v24  ;;  %v132_v13 = vpop.permute.xlu1 %131 }
  0xbb   :  { %v144_v14 = vsel %vm137_vm0, %v116_v10, %v132_v13  ;;  %v152_v15 = vsel %vm137_vm0, %v132_v13, %v116_v10 }
  0xbc   :  { %242 = vrot.lane.b32.xlu1 %v206_v11, %s866_s1  ;;  %228 = vrot.lane.b32.xlu0 %v1023_v12, %s866_s1  ;;  %v176_v16 = vcombine.low %v152_v15, %v144_v14  ;;  %v118_v17 = vpop.permute.xlu0 %117  ;;  %v207_v19 = vcombine.high %v1023_v12, %v1023_v12 }
  0xbe   :  { %v134_v20 = vpop.permute.xlu1 %133  ;;  %v1037_v21 = vadd.f32 %v176_v16, %v946_v27 }
  0xbf   :  { %v145_v22 = vsel %vm137_vm0, %v118_v17, %v134_v20  ;;  %v153_v23 = vsel %vm137_vm0, %v134_v20, %v118_v17 }
  0xc0   :  { %234 = vrot.lane.b32.xlu0 %v202_v18, %s866_s1  ;;  %244 = vrot.lane.b32.xlu1 %v207_v19, %s866_s1  ;;  %v177_v24 = vcombine.low %v153_v23, %v145_v22  ;;  %v208_v25 = vcombine.high %v1037_v21, %v1037_v21 }
  0xc2   :  { %v1048_v26 = vadd.f32 %v177_v24, %v953_v30 }
  0xc4   :  { %230 = vrot.lane.b32.xlu0 %v1037_v21, %s866_s1  ;;  %246 = vrot.lane.b32.xlu1 %v208_v25, %s866_s1  ;;  %v209_v27 = vcombine.high %v1048_v26, %v1048_v26 }
  0xc8   :  { %232 = vrot.lane.b32.xlu0 %v1048_v26, %s866_s1  ;;  %248 = vrot.lane.b32.xlu1 %v209_v27, %s866_s1 }
 0x11a   :  { %v219_v28 = vpop.permute.xlu0 %218 }
 0x11e   :  { %v221_v29 = vpop.permute.xlu1 %220 }
 0x122   :  { %v223_v31 = vpop.permute.xlu0 %222  ;;  %v237_v30 = vpop.permute.xlu1 %236 }
 0x123   :  { %v252_v33 = vsel %vm250_vm1, %v221_v29, %v237_v30  ;;  %v260_v34 = vsel %vm250_vm1, %v237_v30, %v221_v29 }
 0x124   :  { %v284_v35 = vcombine.low %v260_v34, %v252_v33 }
 0x126   :  { %v225_v36 = vpop.permute.xlu0 %224  ;;  %v239_v37 = vpop.permute.xlu1 %238  ;;  %v1064_v38 = vadd.f32 %v284_v35, %v978_v46 }
 0x127   :  { %v253_v39 = vsel %vm250_vm1, %v223_v31, %v239_v37  ;;  %v261_v41 = vsel %vm250_vm1, %v239_v37, %v223_v31 }
 0x128   :  { %v285_v42 = vcombine.low %v261_v41, %v253_v39  ;;  %333 = vrot.lane.b32.xlu1 %v1064_v38, %s867_s13  ;;  %v316_v46 = vcombine.high %v1064_v38, %v1064_v38 }
 0x12a   :  { %v1073_v43 = vadd.f32 %v285_v42, %v988_v53  ;;  %v227_v44 = vpop.permute.xlu0 %226  ;;  %v241_v45 = vpop.permute.xlu1 %240 }
 0x12b   :  { %v254_v47 = vsel %vm250_vm1, %v225_v36, %v241_v45  ;;  %v262_v48 = vsel %vm250_vm1, %v241_v45, %v225_v36 }
 0x12c   :  { %v286_v49 = vcombine.low %v262_v48, %v254_v47  ;;  %349 = vrot.lane.b32.xlu1 %v316_v46, %s867_s13  ;;  %v317_v53 = vcombine.high %v1073_v43, %v1073_v43 }
 0x12e   :  { %v1083_v50 = vadd.f32 %v286_v49, %v999_v60  ;;  %v229_v51 = vpop.permute.xlu0 %228  ;;  %v243_v52 = vpop.permute.xlu1 %242 }
 0x12f   :  { %v255_v54 = vsel %vm250_vm1, %v227_v44, %v243_v52  ;;  %v263_v55 = vsel %vm250_vm1, %v243_v52, %v227_v44 }
 0x130   :  { %v287_v56 = vcombine.low %v263_v55, %v255_v54  ;;  %351 = vrot.lane.b32.xlu1 %v317_v53, %s867_s13  ;;  %v318_v60 = vcombine.high %v1083_v50, %v1083_v50 }
 0x132   :  { %v1093_v57 = vadd.f32 %v287_v56, %v1011_v6  ;;  %v235_v58 = vpop.permute.xlu0 %234  ;;  %v245_v59 = vpop.permute.xlu1 %244 }
 0x133   :  { %v251_v61 = vsel %vm250_vm1, %v219_v28, %v235_v58  ;;  %v259_v62 = vsel %vm250_vm1, %v235_v58, %v219_v28  ;;  %v256_v63 = vsel %vm250_vm1, %v229_v51, %v245_v59  ;;  %v264_v0 = vsel %vm250_vm1, %v245_v59, %v229_v51 }
 0x134   :  { %v283_v2 = vcombine.low %v259_v62, %v251_v61  ;;  %v288_v5 = vcombine.low %v264_v0, %v256_v63  ;;  %353 = vrot.lane.b32.xlu1 %v318_v60, %s867_s13  ;;  %v319_v10 = vcombine.high %v1093_v57, %v1093_v57 }
 0x136   :  { %v1107_v6 = vadd.f32 %v288_v5, %v1023_v12  ;;  %v231_v7 = vpop.permute.xlu0 %230  ;;  %v247_v8 = vpop.permute.xlu1 %246  ;;  %v1110_v9 = vadd.f32 %v283_v2, %v970_v40 }
 0x137   :  { %v257_v11 = vsel %vm250_vm1, %v231_v7, %v247_v8  ;;  %v265_v13 = vsel %vm250_vm1, %v247_v8, %v231_v7 }
 0x138   :  { %v289_v14 = vcombine.low %v265_v13, %v257_v11  ;;  %331 = vrot.lane.b32.xlu0 %v1110_v9, %s867_s13  ;;  %355 = vrot.lane.b32.xlu1 %v319_v10, %s867_s13  ;;  %v320_v16 = vcombine.high %v1107_v6, %v1107_v6  ;;  %v315_v23 = vcombine.high %v1110_v9, %v1110_v9 }
 0x13a   :  { %v1122_v12 = vadd.f32 %v289_v14, %v1037_v21  ;;  %v233_v40 = vpop.permute.xlu0 %232  ;;  %v249_v15 = vpop.permute.xlu1 %248 }
 0x13b   :  { %v258_v17 = vsel %vm250_vm1, %v233_v40, %v249_v15  ;;  %v266_v18 = vsel %vm250_vm1, %v249_v15, %v233_v40 }
 0x13c   :  { %v290_v19 = vcombine.low %v266_v18, %v258_v17  ;;  %335 = vrot.lane.b32.xlu0 %v1073_v43, %s867_s13  ;;  %357 = vrot.lane.b32.xlu1 %v320_v16, %s867_s13  ;;  %v321_v21 = vcombine.high %v1122_v12, %v1122_v12 }
 0x13e   :  { %v1134_v20 = vadd.f32 %v290_v19, %v1048_v26 }
 0x140   :  { %337 = vrot.lane.b32.xlu0 %v1083_v50, %s867_s13  ;;  %359 = vrot.lane.b32.xlu1 %v321_v21, %s867_s13  ;;  %v322_v22 = vcombine.high %v1134_v20, %v1134_v20  ;;  %v550_v21 = vld [vmem:[%s1355_s2] sm:$0x3] }
 0x144   :  { %339 = vrot.lane.b32.xlu0 %v1093_v57, %s867_s13  ;;  %361 = vrot.lane.b32.xlu1 %v322_v22, %s867_s13 }
 0x148   :  { %341 = vrot.lane.b32.xlu0 %v1107_v6, %s867_s13 }
 0x14c   :  { %347 = vrot.lane.b32.xlu0 %v315_v23, %s867_s13 }
 0x150   :  { %343 = vrot.lane.b32.xlu0 %v1122_v12, %s867_s13 }
 0x154   :  { %345 = vrot.lane.b32.xlu0 %v1134_v20, %s867_s13 }
 0x19a   :  { %v334_v24 = vpop.permute.xlu1 %333 }
 0x19e   :  { %v350_v25 = vpop.permute.xlu1 %349 }
 0x19f   :  { %v365_v26 = vsel %vm363_vm2, %v334_v24, %v350_v25  ;;  %v373_v27 = vsel %vm363_vm2, %v350_v25, %v334_v24 }
 0x1a0   :  { %v397_v28 = vcombine.low %v373_v27, %v365_v26  ;;  %v555_v26 = vrot.slane %v550_v21, %v63_v3  ;;  %v559_v27 = vrot.slane %v550_v21, %v67_v4 }
 0x1a2   :  { %v1161_v29 = vadd.f32 %v397_v28, %v1064_v38  ;;  %v352_v30 = vpop.permute.xlu1 %351  ;;  %v1264_v28 = vstv %s48_s14 }
 0x1a4   :  { %446 = vrot.lane.b32.xlu1 %v1161_v29, %s863_s6  ;;  %v429_v31 = vcombine.high %v1161_v29, %v1161_v29 }
 0x1a6   :  { %v354_v34 = vpop.permute.xlu1 %353 }
 0x1a8   :  { %462 = vrot.lane.b32.xlu1 %v429_v31, %s863_s6 }
 0x1aa   :  { %v332_v33 = vpop.permute.xlu0 %331  ;;  %v356_v45 = vpop.permute.xlu1 %355 }
 0x1ae   :  { %v336_v35 = vpop.permute.xlu0 %335  ;;  %v358_v54 = vpop.permute.xlu1 %357 }
 0x1af   :  { %v366_v36 = vsel %vm363_vm2, %v336_v35, %v352_v30  ;;  %v374_v37 = vsel %vm363_vm2, %v352_v30, %v336_v35 }
 0x1b0   :  { %v398_v38 = vcombine.low %v374_v37, %v366_v36 }
 0x1b2   :  { %v1173_v39 = vadd.f32 %v398_v38, %v1073_v43  ;;  %v338_v41 = vpop.permute.xlu0 %337  ;;  %v360_v0 = vpop.permute.xlu1 %359 }
 0x1b3   :  { %v367_v42 = vsel %vm363_vm2, %v338_v41, %v354_v34  ;;  %v375_v44 = vsel %vm363_vm2, %v354_v34, %v338_v41 }
 0x1b4   :  { %v399_v46 = vcombine.low %v375_v44, %v367_v42  ;;  %v430_v47 = vcombine.high %v1173_v39, %v1173_v39 }
 0x1b6   :  { %v1182_v48 = vadd.f32 %v399_v46, %v1083_v50  ;;  %v340_v49 = vpop.permute.xlu0 %339  ;;  %464 = vrot.lane.b32.xlu1 %v430_v47, %s863_s6  ;;  %v362_v13 = vpop.permute.xlu1 %361 }
 0x1b7   :  { %v368_v43 = vsel %vm363_vm2, %v340_v49, %v356_v45  ;;  %v376_v51 = vsel %vm363_vm2, %v356_v45, %v340_v49 }
 0x1b8   :  { %v400_v52 = vcombine.low %v376_v51, %v368_v43  ;;  %v431_v53 = vcombine.high %v1182_v48, %v1182_v48 }
 0x1ba   :  { %v1192_v55 = vadd.f32 %v400_v52, %v1093_v57  ;;  %v342_v56 = vpop.permute.xlu0 %341  ;;  %466 = vrot.lane.b32.xlu1 %v431_v53, %s863_s6 }
 0x1bb   :  { %v369_v50 = vsel %vm363_vm2, %v342_v56, %v358_v54  ;;  %v377_v58 = vsel %vm363_vm2, %v358_v54, %v342_v56 }
 0x1bc   :  { %v401_v59 = vcombine.low %v377_v58, %v369_v50  ;;  %v432_v60 = vcombine.high %v1192_v55, %v1192_v55 }
 0x1be   :  { %v1202_v61 = vadd.f32 %v401_v59, %v1107_v6  ;;  %v348_v62 = vpop.permute.xlu0 %347  ;;  %468 = vrot.lane.b32.xlu1 %v432_v60, %s863_s6 }
 0x1bf   :  { %v364_v57 = vsel %vm363_vm2, %v332_v33, %v348_v62  ;;  %v372_v63 = vsel %vm363_vm2, %v348_v62, %v332_v33  ;;  %v1268_v33 = vcombine.low %v555_v26, %v559_v27 }
 0x1c0   :  { %v396_v2 = vcombine.low %v372_v63, %v364_v57  ;;  %v433_v5 = vcombine.high %v1202_v61, %v1202_v61 }
 0x1c2   :  { %v344_v7 = vpop.permute.xlu0 %343  ;;  %470 = vrot.lane.b32.xlu1 %v433_v5, %s863_s6  ;;  %v1213_v6 = vadd.f32 %v396_v2, %v1110_v9 }
 0x1c3   :  { %v370_v8 = vsel %vm363_vm2, %v344_v7, %v360_v0  ;;  %v378_v10 = vsel %vm363_vm2, %v360_v0, %v344_v7 }
 0x1c4   :  { %v402_v11 = vcombine.low %v378_v10, %v370_v8  ;;  %444 = vrot.lane.b32.xlu0 %v1213_v6, %s863_s6  ;;  %v428_v19 = vcombine.high %v1213_v6, %v1213_v6 }
 0x1c6   :  { %v1222_v14 = vadd.f32 %v402_v11, %v1122_v12  ;;  %v346_v40 = vpop.permute.xlu0 %345 }
 0x1c7   :  { %v371_v15 = vsel %vm363_vm2, %v346_v40, %v362_v13  ;;  %v379_v9 = vsel %vm363_vm2, %v362_v13, %v346_v40 }
 0x1c8   :  { %v403_v16 = vcombine.low %v379_v9, %v371_v15  ;;  %448 = vrot.lane.b32.xlu0 %v1173_v39, %s863_s6  ;;  %v434_v17 = vcombine.high %v1222_v14, %v1222_v14 }
 0x1ca   :  { %v1233_v18 = vadd.f32 %v403_v16, %v1134_v20  ;;  %472 = vrot.lane.b32.xlu1 %v434_v17, %s863_s6 }
 0x1cc   :  { %450 = vrot.lane.b32.xlu0 %v1182_v48, %s863_s6  ;;  %v435_v12 = vcombine.high %v1233_v18, %v1233_v18 }
 0x1ce   :  { %474 = vrot.lane.b32.xlu1 %v435_v12, %s863_s6 }
 0x1d0   :  { %452 = vrot.lane.b32.xlu0 %v1192_v55, %s863_s6 }
 0x1d4   :  { %454 = vrot.lane.b32.xlu0 %v1202_v61, %s863_s6 }
 0x1d8   :  { %460 = vrot.lane.b32.xlu0 %v428_v19, %s863_s6 }
 0x1dc   :  { %456 = vrot.lane.b32.xlu0 %v1222_v14, %s863_s6 }
 0x1e0   :  { %458 = vrot.lane.b32.xlu0 %v1233_v18, %s863_s6 }
 0x216   :  { %v447_v20 = vpop.permute.xlu1 %446 }
 0x21a   :  { %v463_v22 = vpop.permute.xlu1 %462 }
 0x21b   :  { %v478_v23 = vsel %vm476_vm3, %v447_v20, %v463_v22  ;;  %v486_v24 = vsel %vm476_vm3, %v463_v22, %v447_v20 }
 0x21c   :  { %v510_v25 = vcombine.low %v486_v24, %v478_v23 }
 0x21e   :  { %v526_v31 = vadd.f32 %v510_v25, %v1161_v29 }
 0x220   :  { %v535_v30 = vadd.f32 %v1264_v28, %v526_v31 }
 0x222   :  { %v543_v34 = vmax.f32 %v535_v30, 0.0 }
 0x224   :  { %v563_v35 = vmul.f32 %v1268_v33, %v543_v34 }
 0x226   :  { %v579_v36 = vcombine.high %v563_v35, %v563_v35  ;;  %v600_v37 = vsel %vm594_vm4, %v563_v35, 0.0 }
 0x228   :  { %v601_v3 = vsel %vm594_vm4, %v579_v36, 0.0  ;;  %v465_v4 = vpop.permute.xlu1 %464 }
 0x229   :  { %v602_v38 = vadd.f32 %v601_v3, %v600_v37 }
 0x22b   :  { %603 = vadd.xlane.f32.xlu1 %v602_v38 }
 0x22c   :  { %v467_v42 = vpop.permute.xlu1 %466 }
 0x230   :  { %v469_v47 = vpop.permute.xlu1 %468 }
 0x234   :  { %v471_v59 = vpop.permute.xlu1 %470 }
 0x236   :  { %v445_v41 = vpop.permute.xlu0 %444 }
 0x23a   :  { %v449_v44 = vpop.permute.xlu0 %448 }
 0x23b   :  { %v479_v29 = vsel %vm476_vm3, %v449_v44, %v465_v4  ;;  %v487_v45 = vsel %vm476_vm3, %v465_v4, %v449_v44 }
 0x23c   :  { %v511_v49 = vcombine.low %v487_v45, %v479_v29  ;;  %v473_v11 = vpop.permute.xlu1 %472 }
 0x23e   :  { %v451_v46 = vpop.permute.xlu0 %450  ;;  %v527_v50 = vadd.f32 %v511_v49, %v1173_v39 }
 0x23f   :  { %v480_v43 = vsel %vm476_vm3, %v451_v46, %v467_v42  ;;  %v488_v51 = vsel %vm476_vm3, %v467_v42, %v451_v46 }
 0x240   :  { %v512_v58 = vcombine.low %v488_v51, %v480_v43  ;;  %v536_v2 = vadd.f32 %v1264_v28, %v527_v50 }
 0x242   :  { %v453_v52 = vpop.permute.xlu0 %452  ;;  %v528_v5 = vadd.f32 %v512_v58, %v1182_v48  ;;  %v544_v9 = vmax.f32 %v536_v2, 0.0 }
 0x243   :  { %v481_v53 = vsel %vm476_vm3, %v453_v52, %v469_v47  ;;  %v489_v54 = vsel %vm476_vm3, %v469_v47, %v453_v52 }
 0x244   :  { %v513_v56 = vcombine.low %v489_v54, %v481_v53  ;;  %v537_v15 = vadd.f32 %v1264_v28, %v528_v5 }
 0x246   :  { %v529_v60 = vadd.f32 %v513_v56, %v1192_v55  ;;  %v455_v62 = vpop.permute.xlu0 %454  ;;  %v545_v26 = vmax.f32 %v537_v15, 0.0 }
 0x247   :  { %v482_v57 = vsel %vm476_vm3, %v455_v62, %v471_v59  ;;  %v490_v63 = vsel %vm476_vm3, %v471_v59, %v455_v62 }
 0x248   :  { %v538_v0 = vadd.f32 %v1264_v28, %v529_v60  ;;  %v514_v7 = vcombine.low %v490_v63, %v482_v57 }
 0x24a   :  { %v461_v8 = vpop.permute.xlu0 %460  ;;  %v546_v39 = vmax.f32 %v538_v0, 0.0  ;;  %v530_v16 = vadd.f32 %v514_v7, %v1202_v61  ;;  %v564_v61 = vmul.f32 %v1268_v33, %v544_v9 }
 0x24b   :  { %v477_v10 = vsel %vm476_vm3, %v445_v41, %v461_v8  ;;  %v485_v55 = vsel %vm476_vm3, %v461_v8, %v445_v41  ;;  %v565_v41 = vmul.f32 %v1268_v33, %v545_v26 }
 0x24c   :  { %v509_v13 = vcombine.low %v485_v55, %v477_v10  ;;  %v566_v40 = vmul.f32 %v1268_v33, %v546_v39  ;;  %v539_v27 = vadd.f32 %v1264_v28, %v530_v16  ;;  %v580_v4 = vcombine.high %v564_v61, %v564_v61 }
 0x24d   :  { %v581_v53 = vcombine.high %v565_v41, %v565_v41  ;;  %v610_v2 = vsel %vm594_vm4, %v565_v41, 0.0  ;;  %v868_v55 = vmov 0  }
 0x24e   :  { %v525_v48 = vadd.f32 %v509_v13, %v1213_v6  ;;  %v457_v17 = vpop.permute.xlu0 %456  ;;  %v582_v12 = vcombine.high %v566_v40, %v566_v40  ;;  %v615_v23 = vsel %vm594_vm4, %v566_v40, 0.0  ;;  %v475_v6 = vpop.permute.xlu1 %474  ;;  %v547_v29 = vmax.f32 %v539_v27, 0.0  ;;  %793 = vset.pattern.permute.xlu1 %v868_v55 }
 0x24f   :  { %v483_v19 = vsel %vm476_vm3, %v457_v17, %v473_v11  ;;  %v491_v20 = vsel %vm476_vm3, %v473_v11, %v457_v17  ;;  %v606_v51 = vsel %vm594_vm4, %v580_v4, 0.0  ;;  %v611_v62 = vsel %vm594_vm4, %v581_v53, 0.0  ;;  %v739_v11 = vld [vmem:[%s1356_s3] sm:$0xf]  ;;  %s781_s3 = sld [smem:[#allocation6 + $0x2]] }
 0x250   :  { %v534_v21 = vadd.f32 %v1264_v28, %v525_v48  ;;  %v515_v22 = vcombine.low %v491_v20, %v483_v19  ;;  %v616_v24 = vsel %vm594_vm4, %v582_v12, 0.0  ;;  %v567_v54 = vmul.f32 %v1268_v33, %v547_v29 }
 0x251   :  { %v617_v25 = vadd.f32 %v616_v24, %v615_v23  ;;  %v612_v7 = vadd.f32 %v611_v62, %v610_v2  ;;  %v635_v13 = vstv %s780_s18  ;;  %v662_v20 = vsub.s32 %v963_v32, %v916_v1 }
 0x252   :  { %v531_v31 = vadd.f32 %v515_v22, %v1222_v14  ;;  %v459_v30 = vpop.permute.xlu0 %458  ;;  %v542_v34 = vmax.f32 %v534_v21, 0.0  ;;  %v583_v57 = vcombine.high %v567_v54, %v567_v54 }
 0x253   :  { %v484_v35 = vsel %vm476_vm3, %v459_v30, %v475_v6  ;;  %v492_v36 = vsel %vm476_vm3, %v475_v6, %v459_v30  ;;  %618 = vadd.xlane.f32.xlu1 %v617_v25 }
 0x254   :  { %v540_v37 = vadd.f32 %v1264_v28, %v531_v31  ;;  %v516_v3 = vcombine.low %v492_v36, %v484_v35  ;;  %v562_v38 = vmul.f32 %v1268_v33, %v542_v34  ;;  %v621_v39 = vsel %vm594_vm4, %v583_v57, 0.0 }
 0x256   :  { %v532_v42 = vadd.f32 %v516_v3, %v1233_v18  ;;  %v578_v14 = vcombine.high %v562_v38, %v562_v38  ;;  %v548_v44 = vmax.f32 %v540_v37, 0.0  ;;  %v595_v46 = vsel %vm594_vm4, %v562_v38, 0.0 }
 0x258   :  { %v541_v45 = vadd.f32 %v1264_v28, %v532_v42  ;;  %v596_v47 = vsel %vm594_vm4, %v578_v14, 0.0  ;;  %v568_v49 = vmul.f32 %v1268_v33, %v548_v44  ;;  %v605_v28 = vsel %vm594_vm4, %v564_v61, 0.0 }
 0x259   :  { %v597_v43 = vadd.f32 %v596_v47, %v595_v46  ;;  %v607_v60 = vadd.f32 %v606_v51, %v605_v28 }
 0x25a   :  { %v584_v52 = vcombine.high %v568_v49, %v568_v49  ;;  %v549_v56 = vmax.f32 %v541_v45, 0.0  ;;  %v625_v18 = vsel %vm594_vm4, %v568_v49, 0.0 }
 0x25b   :  { %598 = vadd.xlane.f32.xlu0 %v597_v43 }
 0x25c   :  { %v626_v50 = vsel %vm594_vm4, %v584_v52, 0.0  ;;  %v569_v58 = vmul.f32 %v1268_v33, %v549_v56  ;;  %v620_v33 = vsel %vm594_vm4, %v567_v54, 0.0 }
 0x25d   :  { %v627_v59 = vadd.f32 %v626_v50, %v625_v18  ;;  %v622_v10 = vadd.f32 %v621_v39, %v620_v33 }
 0x25e   :  { %v585_v63 = vcombine.high %v569_v58, %v569_v58  ;;  %v630_v0 = vsel %vm594_vm4, %v569_v58, 0.0 }
 0x25f   :  { %628 = vadd.xlane.f32.xlu1 %v627_v59  ;;  %608 = vadd.xlane.f32.xlu0 %v607_v60  ;;  %v754_v60 = vstv %s781_s3 }
 0x260   :  { %v631_v5 = vsel %vm594_vm4, %v585_v63, 0.0 }
 0x261   :  { %v632_v8 = vadd.f32 %v631_v5, %v630_v0 }
 0x263   :  { %613 = vadd.xlane.f32.xlu0 %v612_v7 }
 0x267   :  { %623 = vadd.xlane.f32.xlu0 %v622_v10 }
 0x26b   :  { %633 = vadd.xlane.f32.xlu0 %v632_v8 }
 0x270   :  { %742 = vperm.xlu1 %793, %v739_v11  }
 0x2b8   :  { %v604_v40 = vpop.xlane.xlu1 %603 }
 0x2b9   :  { %v637_v16 = vadd.f32 %v635_v13, %v604_v40 }
 0x2bb   :  { %v645_v21 = vmax.f32 %v637_v16, 0.0 }
 0x2bd   :  { %v667_v27 = vrot.slane %v645_v21, %v662_v20 }
 0x2e0   :  { %v619_v17 = vpop.xlane.xlu1 %618 }
 0x2e1   :  { %v640_v23 = vadd.f32 %v635_v13, %v619_v17 }
 0x2e3   :  { %v648_v30 = vmax.f32 %v640_v23, 0.0 }
 0x2e5   :  { %v679_v4 = vrot.slane %v648_v30, %v662_v20 }
 0x2e8   :  { %v599_v15 = vpop.xlane.xlu0 %598 }
 0x2e9   :  { %v636_v9 = vadd.f32 %v635_v13, %v599_v15 }
 0x2eb   :  { %v644_v12 = vmax.f32 %v636_v9, 0.0 }
 0x2ec   :  { %v609_v48 = vpop.xlane.xlu0 %608  ;;  %v629_v61 = vpop.xlane.xlu1 %628 }
 0x2ed   :  { %v638_v19 = vadd.f32 %v635_v13, %v609_v48  ;;  %v663_v25 = vrot.slane %v644_v12, %v662_v20  ;;  %v642_v34 = vadd.f32 %v635_v13, %v629_v61 }
 0x2ef   :  { %v646_v22 = vmax.f32 %v638_v19, 0.0  ;;  %v693_v36 = vsel %vm692_vm5, %v667_v27, %v663_v25  ;;  %v650_v41 = vmax.f32 %v642_v34, 0.0 }
 0x2f0   :  { %v614_v24 = vpop.xlane.xlu0 %613  ;;  %v743_v52 = vpop.permute.xlu1 %742 }
 0x2f1   :  { %v639_v26 = vadd.f32 %v635_v13, %v614_v24  ;;  %v671_v6 = vrot.slane %v646_v22, %v662_v20  ;;  %v687_v47 = vrot.slane %v650_v41, %v662_v20 }
 0x2f3   :  { %v647_v31 = vmax.f32 %v639_v26, 0.0  ;;  %v695_v1 = vsel %vm694_vm6, %v671_v6, %v693_v36 }
 0x2f4   :  { %v624_v35 = vpop.xlane.xlu0 %623 }
 0x2f5   :  { %v675_v37 = vrot.slane %v647_v31, %v662_v20  ;;  %v641_v3 = vadd.f32 %v635_v13, %v624_v35 }
 0x2f7   :  { %v697_v32 = vsel %vm696_vm7, %v675_v37, %v695_v1  ;;  %v649_v38 = vmax.f32 %v641_v3, 0.0 }
 0x2f8   :  { %v634_v42 = vpop.xlane.xlu0 %633  ;;  %v699_v29 = vsel %vm698_vm8, %v679_v4, %v697_v32 }
 0x2f9   :  { %v683_v14 = vrot.slane %v649_v38, %v662_v20  ;;  %v643_v44 = vadd.f32 %v635_v13, %v634_v42 }
 0x2fb   :  { %v651_v45 = vmax.f32 %v643_v44, 0.0  ;;  %v701_v46 = vsel %vm700_vm9, %v683_v14, %v699_v29 }
 0x2fc   :  { %v703_v43 = vsel %vm702_vm10, %v687_v47, %v701_v46 }
 0x2fd   :  { %v691_v49 = vrot.slane %v651_v45, %v662_v20 }
 0x2ff   :  { %v705_v51 = vsel %vm704_vm11, %v691_v49, %v703_v43 }
 0x300   :  { %707 = vxpose.xlu0.b32.start.end [1/1] (short) (narrow) %v705_v51, 8 }
 0x329   :  { %794 = vset.pattern.permute.xlu0 %v868_v55 }
 0x380   :  { %v723_v53 = vpop.trf.xlu0 }
 0x381   :  { %v745_v54 = vmul.f32 %v743_v52, %v723_v53 }
 0x383   :  { %v747_v56 = vsel %vm746_vm12, %v745_v54, 0.0 }
 0x384   :  { %v748_v18 = vrot.slane %v747_v56, 4 }
 0x386   :  { %v749_v50 = vadd.f32 %v748_v18, %v747_v56 }
 0x388   :  { %v750_v28 = vrot.slane %v749_v50, 2 }
 0x38a   :  { %v751_v58 = vadd.f32 %v750_v28, %v749_v50 }
 0x38c   :  { %v752_v59 = vrot.slane %v751_v58, 1 }
 0x38e   :  { %v753_v62 = vadd.f32 %v752_v59, %v751_v58 }
 0x390   :  { %v755_v57 = vadd.f32 %v754_v60, %v753_v62 }
 0x392   :  { %v782_v63 = vmul.f32 -1.442695, %v755_v57 }
 0x394   :  { %795 = vpow2.f32 %v782_v63 }
 0x39e   :  { %v796_v0 = vpop.eup %795 }
 0x39f   :  { %v759_v2 = vadd.f32 1.0, %v796_v0 }
 0x3a1   :  { %797 = vrcp.f32 %v759_v2 }
 0x3ab   :  { %v798_v5 = vpop.eup %797 }
 0x3ac   :  { %763 = vst.msk [vmem:[#allocation7] sm:$0x1] %vm762_vm13, %v798_v5 }
 0x3ad   :  { %844 = shalt.err (!%p841_p3)
}
 0x3ae   :  { %s845_s25 = scalar_lea.hbm %s1358_s5, 16 }
 0x3af   :  { %p846_p4 = scmp.ne.s32.totalorder %s1358_s5, %s845_s25  ;;  %p849_p5 = scmp.lt.u32.totalorder %s845_s25, %s1358_s5 }
 0x3b1   :  { %p851_p6 = pnand %p849_p5, %p846_p4 }
 0x3b3   :  { %854 = shalt.err (!%p851_p6)
}
 0x3b4   :  { %773 = dma.vmem_to_hbm [thread:$0]  %s771_s20, 16, %s1358_s5, [#allocation4]  }
 0x3b5   :  { %859 = dma.done.wait [#allocation4], 16  }
 0x3b6   :  { %860 = vsyncadd [#allocation4], 4294967280 }
 0x3b7   :  { %777 = vsyncpa [#allocation3], 1 }
 0x3b8   :  { %778 = vsyncpa [#allocation4], 1 }
 0x3b9   :  { %779 = vsyncpa [#allocation5], 1 }

</bundles_post_ra>
